<compile_context>
chip_gen: v7x
topology: tpu7x:2x2x1
jax: 0.10.0
libtpu: 0.0.40
codegen_flags: <defaults>
</compile_context>

<pallas_src>
import jax
import jax.numpy as jnp
from jax.experimental import pallas as pl
from jax.experimental.pallas import tpu as pltpu

# ---------------- Config (synthetic, deterministic) ----------------
PAIR_REP_DIM = 32
CLF_FC_DIM = 32
CLF_FC_NUM = 2          # structure fixed in the kernel: 2 hidden fc + lastfc
CLF_CLASS_NUM = 8
BATCH = 8

D_PAD = 128             # lane-dense padded feature width for weights/hidden
MAX_TILE_B = 2048       # batch tile cap (well within VMEM on v5e/v6e/v7x)
SMALL_B = 256           # below this: single full-array block (no padding)
COMPUTE_DTYPE = jnp.bfloat16


def _round_up(n, m):
    return (n + m - 1) // m * m


def _pick_tile_b(B):
    if B <= SMALL_B:
        # Single block equal to the full array dims: always a legal BlockSpec,
        # and at tiny B the whole call is launch-latency bound anyway.
        return B
    half = -(-B // 2)                      # ceil(B/2): guarantees >=2 steps
    return min(MAX_TILE_B, _round_up(half, 256))


def classifier_kernel(x_ref, w_ref, b_ref, out_ref):
    """Fused MLP: relu(x@W0+b0) -> relu(.@W1+b1) -> .@W2+b2 (dropout=identity).

    x_ref: (tile_b, 32) bf16; w_ref: (3, 128, 128) bf16 (resident);
    b_ref: (3, 128) f32 (resident); out_ref: (tile_b, 8) f32.
    """
    x = x_ref[...]                                           # (tile_b, 32)
    w0 = w_ref[0, :PAIR_REP_DIM, :]                          # (32, 128)
    cdt = w0.dtype

    h = jnp.dot(x, w0, preferred_element_type=jnp.float32)   # (tile_b, 128) f32
    h = jnp.maximum(h + b_ref[0:1, :], 0.0)                  # ReLU, f32

    h = jnp.dot(h.astype(cdt), w_ref[1],
                preferred_element_type=jnp.float32)
    h = jnp.maximum(h + b_ref[1:2, :], 0.0)

    o = jnp.dot(h.astype(cdt), w_ref[2],
                preferred_element_type=jnp.float32)
    o = o + b_ref[2:3, :]
    out_ref[...] = o[:, :CLF_CLASS_NUM].astype(out_ref.dtype)


def prepare_weights(params, dtype=COMPUTE_DTYPE):
    """One-time prep: transpose PyTorch [out,in]->[in,out], zero-pad to 128
    lanes, pack the 3 weight matrices into one [3,128,128] slab (dtype bf16)
    and the 3 biases into one [3,128] f32 array."""
    assert PAIR_REP_DIM <= D_PAD and CLF_FC_DIM <= D_PAD and CLF_CLASS_NUM <= D_PAD
    w = jnp.zeros((3, D_PAD, D_PAD), jnp.float32)
    w = w.at[0, :PAIR_REP_DIM, :CLF_FC_DIM].set(params["fc0_w"].T)
    w = w.at[1, :CLF_FC_DIM, :CLF_FC_DIM].set(params["fc1_w"].T)
    w = w.at[2, :CLF_FC_DIM, :CLF_CLASS_NUM].set(params["last_w"].T)
    b = jnp.zeros((3, D_PAD), jnp.float32)
    b = b.at[0, :CLF_FC_DIM].set(params["fc0_b"])
    b = b.at[1, :CLF_FC_DIM].set(params["fc1_b"])
    b = b.at[2, :CLF_CLASS_NUM].set(params["last_b"])
    return w.astype(dtype), b


def classifier_forward(x, w_slab, bias):
    """x: [B, PAIR_REP_DIM]. Returns [B, CLF_CLASS_NUM] float32 logits."""
    B = x.shape[0]
    x = x.astype(w_slab.dtype)             # no-op if activations already bf16
    tile_b = _pick_tile_b(B)
    grid = (pl.cdiv(B, tile_b),)

    return pl.pallas_call(
        classifier_kernel,
        out_shape=jax.ShapeDtypeStruct((B, CLF_CLASS_NUM), jnp.float32),
        grid=grid,
        in_specs=[
            pl.BlockSpec((tile_b, PAIR_REP_DIM), lambda i: (i, 0)),
            # Constant block index -> weight slab / bias stay VMEM-resident.
            pl.BlockSpec((3, D_PAD, D_PAD), lambda i: (0, 0, 0)),
            pl.BlockSpec((3, D_PAD), lambda i: (0, 0)),
        ],
        out_specs=pl.BlockSpec((tile_b, CLF_CLASS_NUM), lambda i: (i, 0)),
        compiler_params=pltpu.CompilerParams(
            dimension_semantics=("parallel",)),
    )(x, w_slab, bias)


def init_params(key):
    """Deterministic init matching _init_weight: uniform weights, zero bias."""
    k1, k2, k3 = jax.random.split(key, 3)
    return {
        # nn.init.uniform(w, -0.01, 0.01) for fc layers; bias = 0
        "fc0_w": jax.random.uniform(k1, (CLF_FC_DIM, PAIR_REP_DIM),
                                    jnp.float32, -0.01, 0.01),
        "fc0_b": jnp.zeros((CLF_FC_DIM,), jnp.float32),
        "fc1_w": jax.random.uniform(k2, (CLF_FC_DIM, CLF_FC_DIM),
                                    jnp.float32, -0.01, 0.01),
        "fc1_b": jnp.zeros((CLF_FC_DIM,), jnp.float32),
        # nn.init.uniform(w, -0.02, 0.02) for lastfc; bias = 0
        "last_w": jax.random.uniform(k3, (CLF_CLASS_NUM, CLF_FC_DIM),
                                     jnp.float32, -0.02, 0.02),
        "last_b": jnp.zeros((CLF_CLASS_NUM,), jnp.float32),
    }


def reference_forward(x, params):
    """Pure-JAX f32 reference of the same forward (inference mode)."""
    h = jnp.maximum(x @ params["fc0_w"].T + params["fc0_b"], 0.0)
    h = jnp.maximum(h @ params["fc1_w"].T + params["fc1_b"], 0.0)
    return h @ params["last_w"].T + params["last_b"]


def _check_close(out, ref, rel=5e-2):
    # bf16 MXU path: check max abs error against the overall logit scale.
    err = float(jnp.max(jnp.abs(out.astype(jnp.float32) - ref)))
    scale = float(jnp.max(jnp.abs(ref))) + 1e-8
    assert err <= rel * scale + 1e-5, (err, scale)


if __name__ == "__main__":
    key = jax.random.PRNGKey(0)
    kx, kx2, kx3, kp = jax.random.split(key, 4)

    params = init_params(kp)
    w_slab, bias = prepare_weights(params)   # one-time, call-site amortized

    # Small batch (matches the module's head usage): single full-array block.
    x = jax.random.normal(kx, (BATCH, PAIR_REP_DIM), jnp.float32)
    out = jax.block_until_ready(classifier_forward(x, w_slab, bias))
    assert out.shape == (BATCH, CLF_CLASS_NUM)
    _check_close(out, reference_forward(x, params))

    # Non-multiple-of-8 batch (full-array block path, odd row count).
    x2 = jax.random.normal(kx2, (50, PAIR_REP_DIM), jnp.float32)
    out2 = jax.block_until_ready(classifier_forward(x2, w_slab, bias))
    assert out2.shape == (50, CLF_CLASS_NUM)
    _check_close(out2, reference_forward(x2, params))

    # Larger batch: gridded path with >=2 "parallel" steps (v7x dual-TC) and
    # a ragged boundary block.
    x3 = jax.random.normal(kx3, (1000, PAIR_REP_DIM), jnp.float32)
    out3 = jax.block_until_ready(classifier_forward(x3, w_slab, bias))
    assert out3.shape == (1000, CLF_CLASS_NUM)
    _check_close(out3, reference_forward(x3, params))

    print("KERNEL_OK")
</pallas_src>

<mosaic_0001>
module attributes {stable_mosaic.version = 11 : i64} {
  func.func @classifier_kernel(%arg0: i32, %arg1: memref<8x32xbf16, #tpu.memory_space<vmem>>, %arg2: memref<3x128x128xbf16, #tpu.memory_space<vmem>>, %arg3: memref<3x128xf32, #tpu.memory_space<vmem>>, %arg4: memref<8x8xf32, #tpu.memory_space<vmem>>) attributes {dimension_semantics = [#tpu.dimension_semantics<parallel>], iteration_bounds = array<i64: 1>, scalar_prefetch = 0 : i64, scratch_operands = 0 : i64, tpu.core_type = #tpu.core_type<tc>, window_params = [{transform_indices = @transform_0, window_bounds = array<i64: 8, 32>}, {pipeline_mode = #tpu.pipeline_mode<synchronous>, transform_indices = @transform_1, window_bounds = array<i64: 3, 128, 128>}, {pipeline_mode = #tpu.pipeline_mode<synchronous>, transform_indices = @transform_2, window_bounds = array<i64: 3, 128>}, {transform_indices = @transform_3, window_bounds = array<i64: 8, 8>}]} {
    %c0 = arith.constant 0 : index
    %c0_0 = arith.constant 0 : index
    %0 = vector.load %arg1[%c0, %c0_0] : memref<8x32xbf16, #tpu.memory_space<vmem>>, vector<8x32xbf16>
    %c0_1 = arith.constant 0 : index
    %c0_2 = arith.constant 0 : index
    %c0_3 = arith.constant 0 : index
    %1 = vector.load %arg2[%c0_1, %c0_2, %c0_3] : memref<3x128x128xbf16, #tpu.memory_space<vmem>>, vector<1x32x128xbf16>
    %2 = vector.shape_cast %1 : vector<1x32x128xbf16> to vector<32x128xbf16>
    %cst = arith.constant dense<0.000000e+00> : vector<8x128xf32>
    %3 = tpu.matmul %0, %2, %cst {dimension_numbers = #tpu.dot_dimension_numbers<[1], [0], [0], [1], [0, 0, 1, 1], [], []>} : vector<8x32xbf16>, vector<32x128xbf16>, vector<8x128xf32> -> vector<8x128xf32>
    %c0_4 = arith.constant 0 : index
    %c0_5 = arith.constant 0 : index
    %4 = vector.load %arg3[%c0_4, %c0_5] : memref<3x128xf32, #tpu.memory_space<vmem>>, vector<1x128xf32>
    %5 = vector.broadcast %4 : vector<1x128xf32> to vector<8x128xf32>
    %6 = arith.addf %3, %5 : vector<8x128xf32>
    %cst_6 = arith.constant 0.000000e+00 : f32
    %7 = vector.broadcast %cst_6 : f32 to vector<8x128xf32>
    %8 = arith.maximumf %6, %7 : vector<8x128xf32>
    %9 = arith.truncf %8 : vector<8x128xf32> to vector<8x128xbf16>
    %c1 = arith.constant 1 : index
    %c0_7 = arith.constant 0 : index
    %c0_8 = arith.constant 0 : index
    %10 = vector.load %arg2[%c1, %c0_7, %c0_8] : memref<3x128x128xbf16, #tpu.memory_space<vmem>>, vector<1x128x128xbf16>
    %11 = vector.shape_cast %10 : vector<1x128x128xbf16> to vector<128x128xbf16>
    %cst_9 = arith.constant dense<0.000000e+00> : vector<8x128xf32>
    %12 = tpu.matmul %9, %11, %cst_9 {dimension_numbers = #tpu.dot_dimension_numbers<[1], [0], [0], [1], [0, 0, 1, 1], [], []>} : vector<8x128xbf16>, vector<128x128xbf16>, vector<8x128xf32> -> vector<8x128xf32>
    %c1_10 = arith.constant 1 : index
    %c0_11 = arith.constant 0 : index
    %13 = vector.load %arg3[%c1_10, %c0_11] : memref<3x128xf32, #tpu.memory_space<vmem>>, vector<1x128xf32>
    %14 = vector.broadcast %13 : vector<1x128xf32> to vector<8x128xf32>
    %15 = arith.addf %12, %14 : vector<8x128xf32>
    %cst_12 = arith.constant 0.000000e+00 : f32
    %16 = vector.broadcast %cst_12 : f32 to vector<8x128xf32>
    %17 = arith.maximumf %15, %16 : vector<8x128xf32>
    %18 = arith.truncf %17 : vector<8x128xf32> to vector<8x128xbf16>
    %c2 = arith.constant 2 : index
    %c0_13 = arith.constant 0 : index
    %c0_14 = arith.constant 0 : index
    %19 = vector.load %arg2[%c2, %c0_13, %c0_14] : memref<3x128x128xbf16, #tpu.memory_space<vmem>>, vector<1x128x128xbf16>
    %20 = vector.shape_cast %19 : vector<1x128x128xbf16> to vector<128x128xbf16>
    %cst_15 = arith.constant dense<0.000000e+00> : vector<8x128xf32>
    %21 = tpu.matmul %18, %20, %cst_15 {dimension_numbers = #tpu.dot_dimension_numbers<[1], [0], [0], [1], [0, 0, 1, 1], [], []>} : vector<8x128xbf16>, vector<128x128xbf16>, vector<8x128xf32> -> vector<8x128xf32>
    %c2_16 = arith.constant 2 : index
    %c0_17 = arith.constant 0 : index
    %22 = vector.load %arg3[%c2_16, %c0_17] : memref<3x128xf32, #tpu.memory_space<vmem>>, vector<1x128xf32>
    %23 = vector.broadcast %22 : vector<1x128xf32> to vector<8x128xf32>
    %24 = arith.addf %21, %23 : vector<8x128xf32>
    %25 = vector.extract_strided_slice %24 {offsets = [0, 0], sizes = [8, 8], strides = [1, 1]} : vector<8x128xf32> to vector<8x8xf32>
    %c0_18 = arith.constant 0 : index
    %c0_19 = arith.constant 0 : index
    %26 = vector.load %arg4[%c0_18, %c0_19] : memref<8x8xf32, #tpu.memory_space<vmem>>, vector<8x8xf32>
    tpu.vector_store %arg4[%c0_18, %c0_19], %25 {strides = array<i32>} : memref<8x8xf32, #tpu.memory_space<vmem>>, vector<8x8xf32>,
    return
  }
  func.func @transform_0(%arg0: i32) -> (i32, i32) {
    %c0_i32 = arith.constant 0 : i32
    %c0_i32_0 = arith.constant 0 : i32
    return %arg0, %c0_i32 : i32, i32
  }
  func.func @transform_1(%arg0: i32) -> (i32, i32, i32) {
    %c0_i32 = arith.constant 0 : i32
    %c0_i32_0 = arith.constant 0 : i32
    %c0_i32_1 = arith.constant 0 : i32
    %c0_i32_2 = arith.constant 0 : i32
    return %c0_i32, %c0_i32_0, %c0_i32_1 : i32, i32, i32
  }
  func.func @transform_2(%arg0: i32) -> (i32, i32) {
    %c0_i32 = arith.constant 0 : i32
    %c0_i32_0 = arith.constant 0 : i32
    %c0_i32_1 = arith.constant 0 : i32
    return %c0_i32, %c0_i32_0 : i32, i32
  }
  func.func @transform_3(%arg0: i32) -> (i32, i32) {
    %c0_i32 = arith.constant 0 : i32
    %c0_i32_0 = arith.constant 0 : i32
    return %arg0, %c0_i32 : i32, i32
  }
}

</mosaic_0001>

<bundles_post_ra>
// kernel: tpu_custom_call.1
= control target key start
LH: loop header
LB: loop body
LE: loop exit
PB: predicated region body
PF: predicated region fallthrough
CT: control target
= control target key end

     0   :  { %8 = vsyncpa [#allocation3], 0  ;;  %s641_s0 = inlined_call_operand.hbm [shape: bf16[8,32], index: 0, kind: input, shape index: {}]   ;;  %s642_s1 = inlined_call_operand.hbm [shape: bf16[3,128,128], index: 1, kind: input, shape index: {}]   ;;  %s643_s2 = inlined_call_operand.vmem [shape: f32[3,128], index: 2, kind: input, shape index: {}]   ;;  %s644_s3 = inlined_call_operand.hbm [shape: f32[8,8], index: 3, kind: output, shape index: {}]  }
   0x1   :  { %9 = vsyncpa [#allocation6], 0 }
   0x2   :  { %10 = vsyncpa [#allocation4], 0  ;;  %s538_s12 = smov [#allocation2]   ;;  %s539_s14 = smov [#allocation5]  }
   0x3   :  { %s17_s13 = sshll.u32 %s538_s12, 4  ;;  %s26_s15 = sshll.u32 %s539_s14, 4  ;;  %s18_s13 = int_to_ptr.vmem [resolvable:$true] %s17_s13  ;;  %s565_s15 = int_to_ptr.vmem [resolvable:$true] %s26_s15 }
   0x4   :  { %s466_s18 = scalar_lea.hbm %s641_s0, 64 }
   0x5   :  { %p467_p0 = scmp.ne.s32.totalorder %s641_s0, %s466_s18  ;;  %p470_p1 = scmp.lt.u32.totalorder %s466_s18, %s641_s0 }
   0x7   :  { %p472_p2 = pnand %p470_p1, %p467_p0 }
   0x9   :  { %475 = shalt.err (!%p472_p2)
}
   0xa   :  { %s476_s23 = scalar_lea.vmem %s18_s13, 64  ;;  %p481_p4 = scmp.lt.s32.totalorder %s18_s13, %s18_s13 }
   0xb   :  { %p477_p3 = scmp.ne.s32.totalorder %s18_s13, %s476_s23  ;;  %p482_p5 = scmp.lt.s32.totalorder %s476_s23, %s476_s23 }
   0xd   :  { %p483_p6 = por %p482_p5, %p481_p4 }
   0xf   :  { %p484_p7 = pnand %p483_p6, %p477_p3 }
  0x11   :  { %487 = shalt.err (!%p484_p7)
}
  0x12   :  { %20 = dma.hbm_to_vmem [thread:$0]  %s641_s0, 64, %s18_s13, [#allocation3]  }
  0x13   :  { %s488_s28 = scalar_lea.hbm %s642_s1, 3072 }
  0x14   :  { %p489_p8 = scmp.ne.s32.totalorder %s642_s1, %s488_s28  ;;  %p492_p9 = scmp.lt.u32.totalorder %s488_s28, %s642_s1 }
  0x16   :  { %p494_p10 = pnand %p492_p9, %p489_p8 }
  0x18   :  { %497 = shalt.err (!%p494_p10)
}
  0x19   :  { %s498_s6 = scalar_lea.vmem %s565_s15, 3072  ;;  %p503_p12 = scmp.lt.s32.totalorder %s565_s15, %s565_s15 }
  0x1a   :  { %p499_p11 = scmp.ne.s32.totalorder %s565_s15, %s498_s6  ;;  %p504_p13 = scmp.lt.s32.totalorder %s498_s6, %s498_s6 }
  0x1c   :  { %p505_p0 = por %p504_p13, %p503_p12 }
  0x1e   :  { %p506_p1 = pnand %p505_p0, %p499_p11 }
  0x20   :  { %509 = shalt.err (!%p506_p1)
}
  0x21   :  { %s540_s0 = smov 64   ;;  %s541_s7 = smov 4  }
  0x22   :  { %32 = dma.hbm_to_vmem [thread:$0]  %s642_s1, 3072, %s565_s15, [#allocation6], %s540_s0, %s540_s0, %s541_s7  }
  0x23   :  { %532 = dma.done.wait [#allocation3], 64  }
  0x24   :  { %533 = vsyncadd [#allocation3], 4294967232 }
  0x25   :  { %534 = dma.done.wait [#allocation6], 3072  }
  0x26   :  { %535 = vsyncadd [#allocation6], 4294964224  ;;  %v542_v0 = vmov 0.0   ;;  %vm543_vm0 = vmmov 0   ;;  %v448_v1 = vld [vmem:[#allocation5] sm:$0xff]   ;;  %v449_v2 = vld [vmem:[#allocation5 + $0x8] sm:$0xff]  }
  0x27   :  { %393 = vmatprep.subr.bf16.mxu0 %v542_v0  ;;  %397 = vmatprep.mubr.msk.bf16.mxu0 %vm543_vm0, %v542_v0  ;;  %v450_v3 = vld [vmem:[#allocation5 + $0x40] sm:$0xff]   ;;  %vm64_vm1 = vcmask 261120   ;;  %v451_v4 = vld [vmem:[#allocation5 + $0x48] sm:$0xff]   ;;  %v42_v5 = vld [vmem:[#allocation2] sm:$0xf]  ;;  %s544_s15 = smov [#allocation7]  }
  0x28   :  { %401 = vmatprep.subr.bf16.mxu1 %v542_v0  ;;  %417 = vmatprep.mubr.msk.bf16.mxu1 %vm543_vm0, %v542_v0  ;;  %v452_v6 = vld [vmem:[#allocation5 + $0x50] sm:$0xff]   ;;  %v453_v7 = vld [vmem:[#allocation5 + $0x58] sm:$0xff]   ;;  %v454_v8 = vld [vmem:[#allocation5 + $0x60] sm:$0xff]   ;;  %s340_s16 = sshll.u32 %s544_s15, 4  ;;  %vm332_vm2 = vcmask 64512   ;;  %s341_s16 = int_to_ptr.vmem [resolvable:$true] %s340_s16 }
  0x29   :  { %394 = vmatpush3.bf16.msra.mxu0 %v448_v1  ;;  %402 = vmatpush3.bf16.msra.mxu1 %v450_v3  ;;  %v455_v9 = vld [vmem:[#allocation5 + $0x68] sm:$0xff]   ;;  %v456_v10 = vld [vmem:[#allocation5 + $0x70] sm:$0xff]   ;;  %v457_v11 = vld [vmem:[#allocation5 + $0x78] sm:$0xff]   ;;  %s510_s17 = scalar_lea.vmem %s341_s16, 128  ;;  %p515_p3 = scmp.lt.s32.totalorder %s341_s16, %s341_s16 }
  0x2a   :  { %395 = vmatprep.subr.bf16.mxu0 %v542_v0  ;;  %403 = vmatprep.subr.bf16.mxu1 %v542_v0  ;;  %v458_v12 = vld [vmem:[#allocation5 + $0x80] sm:$0xff]   ;;  %v459_v13 = vld [vmem:[#allocation5 + $0x88] sm:$0xff]   ;;  %v460_v14 = vld [vmem:[#allocation5 + $0x90] sm:$0xff]   ;;  %p511_p2 = scmp.ne.s32.totalorder %s341_s16, %s510_s17  ;;  %p516_p4 = scmp.lt.s32.totalorder %s510_s17, %s510_s17 }
  0x2b   :  { %v461_v15 = vld [vmem:[#allocation5 + $0x98] sm:$0xff]   ;;  %v462_v16 = vld [vmem:[#allocation5 + $0xa0] sm:$0xff]   ;;  %v463_v17 = vld [vmem:[#allocation5 + $0xa8] sm:$0xff]  }
  0x2c   :  { %v350_v18 = vld [vmem:[%s643_s2] ss:$0 sm:$0xff]  ;;  %v464_v26 = vld [vmem:[#allocation5 + $0xb0] sm:$0xff]   ;;  %v354_v28 = vld [vmem:[%s643_s2 + $0x1] ss:$0 sm:$0xff]  ;;  %p517_p5 = por %p516_p4, %p515_p3 }
  0x2d   :  { %396 = vmatpush3.bf16.msra.mxu0 %v449_v2  ;;  %404 = vmatpush3.bf16.msra.mxu1 %v451_v4  ;;  %v465_v27 = vld [vmem:[#allocation5 + $0xb8] sm:$0xff]  }
  0x2e   :  { %421 = vmatprep.subr.bf16.mxu0 %v542_v0  ;;  %405 = vmatprep.subr.bf16.mxu1 %v542_v0  ;;  %v363_v36 = vld [vmem:[%s643_s2 + $0x2] ss:$0 sm:$0xff]  ;;  %p518_p6 = pnand %p517_p5, %p511_p2 }
  0x30   :  { %398 = vmatmul.mubr.msk.bf16.vlgmr.msra.gmra.mrb[0].mxu0 %vm64_vm1, %v42_v5 }
  0x31   :  { %437 = vmatprep.mubr.msk.bf16.mxu0 %vm543_vm0, %v542_v0  ;;  %406 = vmatpush3.bf16.msra.mxu1 %v452_v6 }
  0x32   :  { %407 = vmatprep.subr.bf16.mxu1 %v542_v0  ;;  %422 = vmatpush3.bf16.msra.mxu0 %v458_v12 }
  0x33   :  { %423 = vmatprep.subr.bf16.mxu0 %v542_v0 }
  0x35   :  { %408 = vmatpush3.bf16.msra.mxu1 %v453_v7 }
  0x36   :  { %409 = vmatprep.subr.bf16.mxu1 %v542_v0  ;;  %424 = vmatpush3.bf16.msra.mxu0 %v459_v13 }
  0x37   :  { %425 = vmatprep.subr.bf16.mxu0 %v542_v0 }
  0x39   :  { %410 = vmatpush3.bf16.msra.mxu1 %v454_v8 }
  0x3a   :  { %411 = vmatprep.subr.bf16.mxu1 %v542_v0  ;;  %426 = vmatpush3.bf16.msra.mxu0 %v460_v14 }
  0x3b   :  { %427 = vmatprep.subr.bf16.mxu0 %v542_v0 }
  0x3d   :  { %412 = vmatpush3.bf16.msra.mxu1 %v455_v9 }
  0x3e   :  { %413 = vmatprep.subr.bf16.mxu1 %v542_v0  ;;  %428 = vmatpush3.bf16.msra.mxu0 %v461_v15 }
  0x3f   :  { %429 = vmatprep.subr.bf16.mxu0 %v542_v0 }
  0x41   :  { %414 = vmatpush3.bf16.msra.mxu1 %v456_v10 }
  0x42   :  { %415 = vmatprep.subr.bf16.mxu1 %v542_v0  ;;  %430 = vmatpush3.bf16.msra.mxu0 %v462_v16 }
  0x43   :  { %431 = vmatprep.subr.bf16.mxu0 %v542_v0 }
  0x45   :  { %416 = vmatpush3.bf16.msra.mxu1 %v457_v11 }
  0x46   :  { %432 = vmatpush3.bf16.msra.mxu0 %v463_v17 }
  0x47   :  { %433 = vmatprep.subr.bf16.mxu0 %v542_v0 }
  0x4a   :  { %434 = vmatpush3.bf16.msra.mxu0 %v464_v26 }
  0x4b   :  { %435 = vmatprep.subr.bf16.mxu0 %v542_v0 }
  0x4e   :  { %436 = vmatpush3.bf16.msra.mxu0 %v465_v27 }
 0x103   :  { %v102_v19 = vpop.f32.mrb[0].mxu0 }
 0x104   :  { %v103_v20 = vadd.f32 %v350_v18, %v102_v19  ;;  %v399_v21 = vpop.f32.mrb[1].mxu0 }
 0x105   :  { %v105_v22 = vpop.f32.mrb[2].mxu0 }
 0x106   :  { %v108_v23 = vmax.f32 %v103_v20, 0.0  ;;  %v400_v24 = vpop.f32.mrb[3].mxu0 }
 0x108   :  { %v109_v25 = vpack.c.bf16 %v108_v23, %v108_v23 }
 0x10a   :  { %418 = vmatmul.mubr.bf16.vlgmr.msra.gmra.mrb[0].mxu1 %v109_v25 }
 0x1dd   :  { %v214_v29 = vpop.f32.mrb[0].mxu1 }
 0x1de   :  { %v215_v30 = vadd.f32 %v354_v28, %v214_v29  ;;  %v419_v31 = vpop.f32.mrb[1].mxu1 }
 0x1df   :  { %v217_v32 = vpop.f32.mrb[2].mxu1 }
 0x1e0   :  { %v220_v33 = vmax.f32 %v215_v30, 0.0  ;;  %v420_v34 = vpop.f32.mrb[3].mxu1 }
 0x1e2   :  { %v221_v35 = vpack.c.bf16 %v220_v33, %v220_v33 }
 0x1e4   :  { %438 = vmatmul.mubr.bf16.vlgmr.msra.gmra.mrb[4].mxu0 %v221_v35 }
 0x2b7   :  { %v326_v37 = vpop.f32.mrb[4].mxu0 }
 0x2b8   :  { %v327_v38 = vadd.f32 %v363_v36, %v326_v37  ;;  %v439_v39 = vpop.f32.mrb[5].mxu0 }
 0x2b9   :  { %v329_v40 = vpop.f32.mrb[6].mxu0 }
 0x2ba   :  { %v440_v41 = vpop.f32.mrb[7].mxu0  ;;  %333 = vst.msk [vmem:[#allocation7] sm:$0xff] %vm332_vm2, %v327_v38 }
 0x2bb   :  { %521 = shalt.err (!%p518_p6)
}
 0x2bc   :  { %s522_s2 = scalar_lea.hbm %s644_s3, 128 }
 0x2bd   :  { %p523_p7 = scmp.ne.s32.totalorder %s644_s3, %s522_s2  ;;  %p526_p8 = scmp.lt.u32.totalorder %s522_s2, %s644_s3 }
 0x2bf   :  { %p528_p9 = pnand %p526_p8, %p523_p7 }
 0x2c1   :  { %531 = shalt.err (!%p528_p9)
}
 0x2c2   :  { %343 = dma.vmem_to_hbm [thread:$0]  %s341_s16, 128, %s644_s3, [#allocation4]  }
 0x2c3   :  { %536 = dma.done.wait [#allocation4], 128  }
 0x2c4   :  { %537 = vsyncadd [#allocation4], 4294967168 }
 0x2c5   :  { %347 = vsyncpa [#allocation3], 1 }
 0x2c6   :  { %348 = vsyncpa [#allocation6], 1 }
 0x2c7   :  { %349 = vsyncpa [#allocation4], 1 }

</bundles_post_ra>
